<compile_context>
chip_gen: v7x
topology: tpu7x:2x2x1
jax: 0.10.0
libtpu: 0.0.40
codegen_flags: <defaults>
</compile_context>

<pallas_src>
import functools

import jax
import jax.numpy as jnp
from jax import lax
from jax.experimental import pallas as pl
from jax.experimental.pallas import tpu as pltpu

KH = KW = 3          # kernel_size = 3 (stride=1, padding=1)
EPS = 1e-5           # BatchNorm eps
ALPHA = 0.03         # LeakyReLU negative_slope (module default alpha_leaky=0.03)


def _shift_lanes(x, s, hw):
    """Return y with y[:, p] = x[:, p + s] where p+s is in range, else 0.

    x is (C, HW) with HW on the lane axis; s is a small static shift.
    Implemented as a static lane slice + concat with zeros (unambiguous
    semantics; pltpu.roll + mask is an equivalent XLU-only alternative).
    """
    if s == 0:
        return x
    c = x.shape[0]
    if s > 0:
        return jnp.concatenate([x[:, s:], jnp.zeros((c, s), x.dtype)], axis=1)
    return jnp.concatenate([jnp.zeros((c, -s), x.dtype), x[:, :hw + s]], axis=1)


def _conv_stats_kernel(x_ref, w_ref, conv_ref, stats_ref, *, H, W):
    """Pass 1: 3x3 conv for one image + per-image BN partial statistics.

    x_ref    : (1, Cin, H*W)      image, spatial flattened onto lanes
    w_ref    : (Cout, KH*KW*Cin)  weights, rows ordered (kh, kw) outer, cin inner
    conv_ref : (1, Cout, H*W)     f32 pre-BN conv output (lane-dense)
    stats_ref: (1, Cout, 2)       per-image [sum, sum_of_squares] per channel
    """
    hw = x_ref.shape[2]
    x = x_ref[0].astype(jnp.float32)                              # (Cin, HW)

    # Static row/col index of every flattened spatial position.  Vector integer
    # div/mod is avoided: reciprocal-multiply + floor is exact for H*W < 2^22.
    pos = lax.broadcasted_iota(jnp.int32, (1, hw), 1)
    row = jnp.floor((pos.astype(jnp.float32) + 0.5) * (1.0 / W)).astype(jnp.int32)
    col = pos - row * W

    # Build the im2col matrix once so the conv is a single MXU matmul with
    # K = 9*Cin instead of 9 tiny (K=Cin) matmuls.  Spatial padding is implicit:
    # taps that fall outside the image are masked to zero.
    taps = []
    for kh in range(KH):
        for kw in range(KW):
            dh, dw = kh - 1, kw - 1
            shifted = _shift_lanes(x, dh * W + dw, hw)            # (Cin, HW)
            rr = row + dh
            cc = col + dw
            valid = (rr >= 0) & (rr < H) & (cc >= 0) & (cc < W)   # (1, HW)
            taps.append(jnp.where(valid, shifted, 0.0))
    patches = jnp.concatenate(taps, axis=0)                       # (9*Cin, HW)

    # (Cout, 9*Cin) @ (9*Cin, HW) -> (Cout, HW): lane-dense result.
    # (On v6e/v7x the operands could be cast to bf16 with the f32 accumulator
    #  kept; left in f32 here for exact parity with the PyTorch module.)
    y = jnp.dot(w_ref[...], patches, preferred_element_type=jnp.float32)

    conv_ref[0] = y.astype(conv_ref.dtype)
    # Per-image BN partials; combined into global batch stats in pass 2.
    s1 = jnp.sum(y, axis=1, keepdims=True)                        # (Cout, 1)
    s2 = jnp.sum(y * y, axis=1, keepdims=True)                    # (Cout, 1)
    stats_ref[0] = jnp.concatenate([s1, s2], axis=1)              # (Cout, 2)


def _bn_lrelu_kernel(conv_ref, stats_ref, gamma_ref, beta_ref, o_ref, *, eps, alpha):
    """Pass 2: global BN stats -> fused scale/shift FMA -> LeakyReLU.

    conv_ref : (1, Cout, H*W)   f32 conv tile for this image
    stats_ref: (N, Cout, 2)     all per-image partials (resident across grid)
    gamma_ref: (Cout, 1)        BN weight
    beta_ref : (Cout, 1)        BN bias
    o_ref    : (1, Cout, H*W)   final output tile (aliases the conv buffer)
    """
    n_img = stats_ref.shape[0]
    hw = conv_ref.shape[2]
    inv_cnt = 1.0 / float(n_img * hw)

    tot = jnp.sum(stats_ref[...], axis=0)                 # (Cout, 2)
    mean = tot[:, 0:1] * inv_cnt                          # (Cout, 1)
    ex2 = tot[:, 1:2] * inv_cnt
    var = jnp.maximum(ex2 - mean * mean, 0.0)             # biased batch variance
    # Fused BN affine: y = conv * scale + shift (one FMA per element).
    scale = gamma_ref[...] * lax.rsqrt(var + eps)         # (Cout, 1)
    shift = beta_ref[...] - mean * scale                  # (Cout, 1)

    y = conv_ref[0] * scale + shift                       # (Cout, HW)
    y = jnp.where(y >= 0, y, alpha * y)                   # LeakyReLU
    o_ref[0] = y.astype(o_ref.dtype)


@jax.jit
def conv_block_forward(x_nchw, weight_oihw, bias, gamma, beta):
    """Matches torch conv_block.forward (k=3, s=1, p=1, train-mode BN, LeakyReLU)."""
    del bias  # cancelled exactly by the BN batch-mean subtraction (see header)
    N, Cin, H, W = x_nchw.shape
    Cout = weight_oihw.shape[0]
    HW = H * W
    K9 = KH * KW * Cin

    # Metadata-only reshape: contiguous NCHW -> (N, Cin, H*W).  No transposes.
    x_flat = x_nchw.reshape(N, Cin, HW)
    # (Cout, Cin, KH, KW) -> (Cout, 9*Cin); row order matches the in-kernel taps
    # ((kh, kw) outer, cin inner).  Tiny (Cout x 9*Cin) one-off transform.
    w_mat = jnp.transpose(weight_oihw, (0, 2, 3, 1)).reshape(Cout, K9)
    w_mat = w_mat.astype(jnp.float32)
    g2 = gamma.reshape(Cout, 1).astype(jnp.float32)
    b2 = beta.reshape(Cout, 1).astype(jnp.float32)

    par = pltpu.CompilerParams(dimension_semantics=("parallel",))

    # ---- Pass 1: conv + per-image BN partials, pipelined over the batch ----
    conv, stats = pl.pallas_call(
        functools.partial(_conv_stats_kernel, H=H, W=W),
        grid=(N,),
        in_specs=[
            pl.BlockSpec((1, Cin, HW), lambda n: (n, 0, 0)),
            pl.BlockSpec((Cout, K9), lambda n: (0, 0)),       # weights stay resident
        ],
        out_specs=[
            pl.BlockSpec((1, Cout, HW), lambda n: (n, 0, 0)),
            pl.BlockSpec((1, Cout, 2), lambda n: (n, 0, 0)),
        ],
        out_shape=(
            jax.ShapeDtypeStruct((N, Cout, HW), jnp.float32),
            jax.ShapeDtypeStruct((N, Cout, 2), jnp.float32),
        ),
        compiler_params=par,
    )(x_flat, w_mat)

    # ---- Pass 2: normalize + LeakyReLU, pipelined over the batch ----
    out_dtype = x_nchw.dtype
    alias = {0: 0} if jnp.dtype(out_dtype) == jnp.dtype(jnp.float32) else {}
    out_flat = pl.pallas_call(
        functools.partial(_bn_lrelu_kernel, eps=EPS, alpha=ALPHA),
        grid=(N,),
        in_specs=[
            pl.BlockSpec((1, Cout, HW), lambda n: (n, 0, 0)),
            pl.BlockSpec((N, Cout, 2), lambda n: (0, 0, 0)),  # stats resident
            pl.BlockSpec((Cout, 1), lambda n: (0, 0)),        # gamma resident
            pl.BlockSpec((Cout, 1), lambda n: (0, 0)),        # beta resident
        ],
        out_specs=pl.BlockSpec((1, Cout, HW), lambda n: (n, 0, 0)),
        out_shape=jax.ShapeDtypeStruct((N, Cout, HW), out_dtype),
        input_output_aliases=alias,    # reuse the conv buffer for the output
        compiler_params=par,
    )(conv, stats, g2, b2)

    # Metadata-only reshape back to NCHW.
    return out_flat.reshape(N, Cout, H, W)


def _reference(x_nchw, weight_oihw, bias, gamma, beta):
    """Pure-JAX reference (conv(+bias) + train-mode BN + LeakyReLU), NCHW."""
    y = lax.conv_general_dilated(
        x_nchw.astype(jnp.float32), weight_oihw.astype(jnp.float32),
        window_strides=(1, 1), padding=((1, 1), (1, 1)),
        dimension_numbers=("NCHW", "OIHW", "NCHW"))
    y = y + bias.reshape(1, -1, 1, 1)
    mean = jnp.mean(y, axis=(0, 2, 3), keepdims=True)
    var = jnp.mean((y - mean) ** 2, axis=(0, 2, 3), keepdims=True)
    y = (y - mean) * lax.rsqrt(var + EPS)
    y = y * gamma.reshape(1, -1, 1, 1) + beta.reshape(1, -1, 1, 1)
    return jnp.where(y >= 0, y, ALPHA * y)


if __name__ == "__main__":
    key = jax.random.PRNGKey(0)
    k_x, k_w, k_b = jax.random.split(key, 3)

    N, Cin, H, W = 2, 4, 16, 16
    Cout = 8

    x = jax.random.normal(k_x, (N, Cin, H, W), dtype=jnp.float32)
    # Deterministic synthetic parameters (shapes per nn.Conv2d / nn.BatchNorm2d).
    fan_in = Cin * KH * KW
    weight = jax.random.normal(k_w, (Cout, Cin, KH, KW), dtype=jnp.float32) / jnp.sqrt(fan_in)
    bias = jax.random.normal(k_b, (Cout,), dtype=jnp.float32) * 0.1
    gamma = jnp.ones((Cout,), dtype=jnp.float32)   # BN default init
    beta = jnp.zeros((Cout,), dtype=jnp.float32)   # BN default init

    out = conv_block_forward(x, weight, bias, gamma, beta)
    jax.block_until_ready(out)

    ref = _reference(x, weight, bias, gamma, beta)
    assert out.shape == (N, Cout, H, W)
    err = float(jnp.max(jnp.abs(out - ref)))
    assert err < 2e-3, err

    print("KERNEL_OK")
</pallas_src>

<mosaic_0001>
module attributes {stable_mosaic.version = 11 : i64} {
  func.func @_bn_lrelu_kernel(%arg0: i32, %arg1: memref<1x8x256xf32, #tpu.memory_space<vmem>>, %arg2: memref<2x8x2xf32, #tpu.memory_space<vmem>>, %arg3: memref<8x1xf32, #tpu.memory_space<vmem>>, %arg4: memref<8x1xf32, #tpu.memory_space<vmem>>, %arg5: memref<1x8x256xf32, #tpu.memory_space<vmem>>) attributes {dimension_semantics = [#tpu.dimension_semantics<parallel>], iteration_bounds = array<i64: 2>, scalar_prefetch = 0 : i64, scratch_operands = 0 : i64, tpu.core_type = #tpu.core_type<tc>, window_params = [{transform_indices = @transform_0, window_bounds = array<i64: 1, 8, 256>}, {pipeline_mode = #tpu.pipeline_mode<synchronous>, transform_indices = @transform_1, window_bounds = array<i64: 2, 8, 2>}, {pipeline_mode = #tpu.pipeline_mode<synchronous>, transform_indices = @transform_2, window_bounds = array<i64: 8, 1>}, {pipeline_mode = #tpu.pipeline_mode<synchronous>, transform_indices = @transform_3, window_bounds = array<i64: 8, 1>}, {transform_indices = @transform_4, window_bounds = array<i64: 1, 8, 256>}]} {
    %c0 = arith.constant 0 : index
    %c0_0 = arith.constant 0 : index
    %c0_1 = arith.constant 0 : index
    %0 = vector.load %arg2[%c0, %c0_0, %c0_1] : memref<2x8x2xf32, #tpu.memory_space<vmem>>, vector<2x8x2xf32>
    %cst = arith.constant dense<0.000000e+00> : vector<8x2xf32>
    %1 = vector.multi_reduction <add>, %0, %cst [0] : vector<2x8x2xf32> to vector<8x2xf32>
    %2 = vector.extract_strided_slice %1 {offsets = [0, 0], sizes = [8, 1], strides = [1, 1]} : vector<8x2xf32> to vector<8x1xf32>
    %cst_2 = arith.constant 0.001953125 : f32
    %3 = vector.broadcast %cst_2 : f32 to vector<8x1xf32>
    %4 = arith.mulf %2, %3 : vector<8x1xf32>
    %5 = vector.extract_strided_slice %1 {offsets = [0, 1], sizes = [8, 1], strides = [1, 1]} : vector<8x2xf32> to vector<8x1xf32>
    %cst_3 = arith.constant 0.001953125 : f32
    %6 = vector.broadcast %cst_3 : f32 to vector<8x1xf32>
    %7 = arith.mulf %5, %6 : vector<8x1xf32>
    %8 = arith.mulf %4, %4 : vector<8x1xf32>
    %9 = arith.subf %7, %8 : vector<8x1xf32>
    %cst_4 = arith.constant 0.000000e+00 : f32
    %10 = vector.broadcast %cst_4 : f32 to vector<8x1xf32>
    %11 = arith.maximumf %9, %10 : vector<8x1xf32>
    %c0_5 = arith.constant 0 : index
    %c0_6 = arith.constant 0 : index
    %12 = vector.load %arg3[%c0_5, %c0_6] : memref<8x1xf32, #tpu.memory_space<vmem>>, vector<8x1xf32>
    %cst_7 = arith.constant 9.99999974E-6 : f32
    %13 = vector.broadcast %cst_7 : f32 to vector<8x1xf32>
    %14 = arith.addf %11, %13 : vector<8x1xf32>
    %15 = math.rsqrt %14 : vector<8x1xf32>
    %16 = arith.mulf %12, %15 : vector<8x1xf32>
    %c0_8 = arith.constant 0 : index
    %c0_9 = arith.constant 0 : index
    %17 = vector.load %arg4[%c0_8, %c0_9] : memref<8x1xf32, #tpu.memory_space<vmem>>, vector<8x1xf32>
    %18 = arith.mulf %4, %16 : vector<8x1xf32>
    %19 = arith.subf %17, %18 : vector<8x1xf32>
    %c0_10 = arith.constant 0 : index
    %c0_11 = arith.constant 0 : index
    %c0_12 = arith.constant 0 : index
    %20 = vector.load %arg1[%c0_10, %c0_11, %c0_12] : memref<1x8x256xf32, #tpu.memory_space<vmem>>, vector<1x8x256xf32>
    %21 = vector.shape_cast %20 : vector<1x8x256xf32> to vector<8x256xf32>
    %22 = vector.broadcast %16 : vector<8x1xf32> to vector<8x256xf32>
    %23 = arith.mulf %21, %22 : vector<8x256xf32>
    %24 = vector.broadcast %19 : vector<8x1xf32> to vector<8x256xf32>
    %25 = arith.addf %23, %24 : vector<8x256xf32>
    %cst_13 = arith.constant 0.000000e+00 : f32
    %26 = vector.broadcast %cst_13 : f32 to vector<8x256xf32>
    %27 = arith.cmpf oge, %25, %26 : vector<8x256xf32>
    %cst_14 = arith.constant 3.000000e-02 : f32
    %28 = vector.broadcast %cst_14 : f32 to vector<8x256xf32>
    %29 = arith.mulf %28, %25 : vector<8x256xf32>
    %30 = arith.select %27, %25, %29 : vector<8x256xi1>, vector<8x256xf32>
    %c0_15 = arith.constant 0 : index
    %c0_16 = arith.constant 0 : index
    %c0_17 = arith.constant 0 : index
    %31 = vector.load %arg5[%c0_15, %c0_16, %c0_17] : memref<1x8x256xf32, #tpu.memory_space<vmem>>, vector<1x8x256xf32>
    %32 = vector.shape_cast %31 : vector<1x8x256xf32> to vector<8x256xf32>
    %33 = vector.shape_cast %30 : vector<8x256xf32> to vector<1x8x256xf32>
    tpu.vector_store %arg5[%c0_15, %c0_16, %c0_17], %33 {strides = array<i32>} : memref<1x8x256xf32, #tpu.memory_space<vmem>>, vector<1x8x256xf32>,
    return
  }
  func.func @transform_0(%arg0: i32) -> (i32, i32, i32) {
    %c0_i32 = arith.constant 0 : i32
    %c0_i32_0 = arith.constant 0 : i32
    %c0_i32_1 = arith.constant 0 : i32
    return %arg0, %c0_i32, %c0_i32_0 : i32, i32, i32
  }
  func.func @transform_1(%arg0: i32) -> (i32, i32, i32) {
    %c0_i32 = arith.constant 0 : i32
    %c0_i32_0 = arith.constant 0 : i32
    %c0_i32_1 = arith.constant 0 : i32
    %c0_i32_2 = arith.constant 0 : i32
    return %c0_i32, %c0_i32_0, %c0_i32_1 : i32, i32, i32
  }
  func.func @transform_2(%arg0: i32) -> (i32, i32) {
    %c0_i32 = arith.constant 0 : i32
    %c0_i32_0 = arith.constant 0 : i32
    %c0_i32_1 = arith.constant 0 : i32
    return %c0_i32, %c0_i32_0 : i32, i32
  }
  func.func @transform_3(%arg0: i32) -> (i32, i32) {
    %c0_i32 = arith.constant 0 : i32
    %c0_i32_0 = arith.constant 0 : i32
    %c0_i32_1 = arith.constant 0 : i32
    return %c0_i32, %c0_i32_0 : i32, i32
  }
  func.func @transform_4(%arg0: i32) -> (i32, i32, i32) {
    %c0_i32 = arith.constant 0 : i32
    %c0_i32_0 = arith.constant 0 : i32
    %c0_i32_1 = arith.constant 0 : i32
    return %arg0, %c0_i32, %c0_i32_0 : i32, i32, i32
  }
}

module attributes {stable_mosaic.version = 11 : i64} {
  func.func @_conv_stats_kernel(%arg0: i32, %arg1: memref<1x4x256xf32, #tpu.memory_space<vmem>>, %arg2: memref<8x36xf32, #tpu.memory_space<vmem>>, %arg3: memref<1x8x256xf32, #tpu.memory_space<vmem>>, %arg4: memref<1x8x2xf32, #tpu.memory_space<vmem>>) attributes {dimension_semantics = [#tpu.dimension_semantics<parallel>], iteration_bounds = array<i64: 2>, scalar_prefetch = 0 : i64, scratch_operands = 0 : i64, tpu.core_type = #tpu.core_type<tc>, window_params = [{transform_indices = @transform_0, window_bounds = array<i64: 1, 4, 256>}, {pipeline_mode = #tpu.pipeline_mode<synchronous>, transform_indices = @transform_1, window_bounds = array<i64: 8, 36>}, {transform_indices = @transform_2, window_bounds = array<i64: 1, 8, 256>}, {transform_indices = @transform_3, window_bounds = array<i64: 1, 8, 2>}]} {
    %c0 = arith.constant 0 : index
    %c0_0 = arith.constant 0 : index
    %c0_1 = arith.constant 0 : index
    %0 = vector.load %arg1[%c0, %c0_0, %c0_1] : memref<1x4x256xf32, #tpu.memory_space<vmem>>, vector<1x4x256xf32>
    %1 = vector.shape_cast %0 : vector<1x4x256xf32> to vector<4x256xf32>
    %2 = tpu.iota {dimensions = array<i32: 1>} : vector<1x256xi32>
    %3 = arith.sitofp %2 : vector<1x256xi32> to vector<1x256xf32>
    %cst = arith.constant 5.000000e-01 : f32
    %4 = vector.broadcast %cst : f32 to vector<1x256xf32>
    %5 = arith.addf %3, %4 : vector<1x256xf32>
    %cst_2 = arith.constant 6.250000e-02 : f32
    %6 = vector.broadcast %cst_2 : f32 to vector<1x256xf32>
    %7 = arith.mulf %5, %6 : vector<1x256xf32>
    %8 = math.floor %7 : vector<1x256xf32>
    %9 = arith.fptosi %8 : vector<1x256xf32> to vector<1x256xi32>
    %c16_i32 = arith.constant 16 : i32
    %10 = vector.broadcast %c16_i32 : i32 to vector<1x256xi32>
    %11 = arith.muli %9, %10 : vector<1x256xi32>
    %12 = arith.subi %2, %11 : vector<1x256xi32>
    %cst_3 = arith.constant 0.000000e+00 : f32
    %13 = vector.broadcast %cst_3 : f32 to vector<4x17xf32>
    %14 = vector.extract_strided_slice %1 {offsets = [0, 0], sizes = [4, 239], strides = [1, 1]} : vector<4x256xf32> to vector<4x239xf32>
    %15 = tpu.concatenate %13, %14 in 1 : vector<4x17xf32>, vector<4x239xf32> -> vector<4x256xf32>
    %c-1_i32 = arith.constant -1 : i32
    %16 = vector.broadcast %c-1_i32 : i32 to vector<1x256xi32>
    %17 = arith.addi %9, %16 : vector<1x256xi32>
    %c-1_i32_4 = arith.constant -1 : i32
    %18 = vector.broadcast %c-1_i32_4 : i32 to vector<1x256xi32>
    %19 = arith.addi %12, %18 : vector<1x256xi32>
    %c0_i32 = arith.constant 0 : i32
    %20 = vector.broadcast %c0_i32 : i32 to vector<1x256xi32>
    %21 = arith.cmpi sge, %17, %20 : vector<1x256xi32>
    %c16_i32_5 = arith.constant 16 : i32
    %22 = vector.broadcast %c16_i32_5 : i32 to vector<1x256xi32>
    %23 = arith.cmpi slt, %17, %22 : vector<1x256xi32>
    %24 = arith.andi %21, %23 : vector<1x256xi1>
    %c0_i32_6 = arith.constant 0 : i32
    %25 = vector.broadcast %c0_i32_6 : i32 to vector<1x256xi32>
    %26 = arith.cmpi sge, %19, %25 : vector<1x256xi32>
    %27 = arith.andi %24, %26 : vector<1x256xi1>
    %c16_i32_7 = arith.constant 16 : i32
    %28 = vector.broadcast %c16_i32_7 : i32 to vector<1x256xi32>
    %29 = arith.cmpi slt, %19, %28 : vector<1x256xi32>
    %30 = arith.andi %27, %29 : vector<1x256xi1>
    %cst_8 = arith.constant 0.000000e+00 : f32
    %31 = vector.shape_cast %30 : vector<1x256xi1> to vector<1x256xi1>
    %32 = vector.broadcast %31 : vector<1x256xi1> to vector<4x256xi1>
    %33 = vector.broadcast %cst_8 : f32 to vector<4x256xf32>
    %34 = arith.select %32, %15, %33 : vector<4x256xi1>, vector<4x256xf32>
    %cst_9 = arith.constant 0.000000e+00 : f32
    %35 = vector.broadcast %cst_9 : f32 to vector<4x16xf32>
    %36 = vector.extract_strided_slice %1 {offsets = [0, 0], sizes = [4, 240], strides = [1, 1]} : vector<4x256xf32> to vector<4x240xf32>
    %37 = tpu.concatenate %35, %36 in 1 : vector<4x16xf32>, vector<4x240xf32> -> vector<4x256xf32>
    %c-1_i32_10 = arith.constant -1 : i32
    %38 = vector.broadcast %c-1_i32_10 : i32 to vector<1x256xi32>
    %39 = arith.addi %9, %38 : vector<1x256xi32>
    %c0_i32_11 = arith.constant 0 : i32
    %40 = vector.broadcast %c0_i32_11 : i32 to vector<1x256xi32>
    %41 = arith.addi %12, %40 : vector<1x256xi32>
    %c0_i32_12 = arith.constant 0 : i32
    %42 = vector.broadcast %c0_i32_12 : i32 to vector<1x256xi32>
    %43 = arith.cmpi sge, %39, %42 : vector<1x256xi32>
    %c16_i32_13 = arith.constant 16 : i32
    %44 = vector.broadcast %c16_i32_13 : i32 to vector<1x256xi32>
    %45 = arith.cmpi slt, %39, %44 : vector<1x256xi32>
    %46 = arith.andi %43, %45 : vector<1x256xi1>
    %c0_i32_14 = arith.constant 0 : i32
    %47 = vector.broadcast %c0_i32_14 : i32 to vector<1x256xi32>
    %48 = arith.cmpi sge, %41, %47 : vector<1x256xi32>
    %49 = arith.andi %46, %48 : vector<1x256xi1>
    %c16_i32_15 = arith.constant 16 : i32
    %50 = vector.broadcast %c16_i32_15 : i32 to vector<1x256xi32>
    %51 = arith.cmpi slt, %41, %50 : vector<1x256xi32>
    %52 = arith.andi %49, %51 : vector<1x256xi1>
    %cst_16 = arith.constant 0.000000e+00 : f32
    %53 = vector.shape_cast %52 : vector<1x256xi1> to vector<1x256xi1>
    %54 = vector.broadcast %53 : vector<1x256xi1> to vector<4x256xi1>
    %55 = vector.broadcast %cst_16 : f32 to vector<4x256xf32>
    %56 = arith.select %54, %37, %55 : vector<4x256xi1>, vector<4x256xf32>
    %cst_17 = arith.constant 0.000000e+00 : f32
    %57 = vector.broadcast %cst_17 : f32 to vector<4x15xf32>
    %58 = vector.extract_strided_slice %1 {offsets = [0, 0], sizes = [4, 241], strides = [1, 1]} : vector<4x256xf32> to vector<4x241xf32>
    %59 = tpu.concatenate %57, %58 in 1 : vector<4x15xf32>, vector<4x241xf32> -> vector<4x256xf32>
    %c-1_i32_18 = arith.constant -1 : i32
    %60 = vector.broadcast %c-1_i32_18 : i32 to vector<1x256xi32>
    %61 = arith.addi %9, %60 : vector<1x256xi32>
    %c1_i32 = arith.constant 1 : i32
    %62 = vector.broadcast %c1_i32 : i32 to vector<1x256xi32>
    %63 = arith.addi %12, %62 : vector<1x256xi32>
    %c0_i32_19 = arith.constant 0 : i32
    %64 = vector.broadcast %c0_i32_19 : i32 to vector<1x256xi32>
    %65 = arith.cmpi sge, %61, %64 : vector<1x256xi32>
    %c16_i32_20 = arith.constant 16 : i32
    %66 = vector.broadcast %c16_i32_20 : i32 to vector<1x256xi32>
    %67 = arith.cmpi slt, %61, %66 : vector<1x256xi32>
    %68 = arith.andi %65, %67 : vector<1x256xi1>
    %c0_i32_21 = arith.constant 0 : i32
    %69 = vector.broadcast %c0_i32_21 : i32 to vector<1x256xi32>
    %70 = arith.cmpi sge, %63, %69 : vector<1x256xi32>
    %71 = arith.andi %68, %70 : vector<1x256xi1>
    %c16_i32_22 = arith.constant 16 : i32
    %72 = vector.broadcast %c16_i32_22 : i32 to vector<1x256xi32>
    %73 = arith.cmpi slt, %63, %72 : vector<1x256xi32>
    %74 = arith.andi %71, %73 : vector<1x256xi1>
    %cst_23 = arith.constant 0.000000e+00 : f32
    %75 = vector.shape_cast %74 : vector<1x256xi1> to vector<1x256xi1>
    %76 = vector.broadcast %75 : vector<1x256xi1> to vector<4x256xi1>
    %77 = vector.broadcast %cst_23 : f32 to vector<4x256xf32>
    %78 = arith.select %76, %59, %77 : vector<4x256xi1>, vector<4x256xf32>
    %cst_24 = arith.constant 0.000000e+00 : f32
    %79 = vector.broadcast %cst_24 : f32 to vector<4x1xf32>
    %80 = vector.extract_strided_slice %1 {offsets = [0, 0], sizes = [4, 255], strides = [1, 1]} : vector<4x256xf32> to vector<4x255xf32>
    %81 = tpu.concatenate %79, %80 in 1 : vector<4x1xf32>, vector<4x255xf32> -> vector<4x256xf32>
    %c0_i32_25 = arith.constant 0 : i32
    %82 = vector.broadcast %c0_i32_25 : i32 to vector<1x256xi32>
    %83 = arith.addi %9, %82 : vector<1x256xi32>
    %c-1_i32_26 = arith.constant -1 : i32
    %84 = vector.broadcast %c-1_i32_26 : i32 to vector<1x256xi32>
    %85 = arith.addi %12, %84 : vector<1x256xi32>
    %c0_i32_27 = arith.constant 0 : i32
    %86 = vector.broadcast %c0_i32_27 : i32 to vector<1x256xi32>
    %87 = arith.cmpi sge, %83, %86 : vector<1x256xi32>
    %c16_i32_28 = arith.constant 16 : i32
    %88 = vector.broadcast %c16_i32_28 : i32 to vector<1x256xi32>
    %89 = arith.cmpi slt, %83, %88 : vector<1x256xi32>
    %90 = arith.andi %87, %89 : vector<1x256xi1>
    %c0_i32_29 = arith.constant 0 : i32
    %91 = vector.broadcast %c0_i32_29 : i32 to vector<1x256xi32>
    %92 = arith.cmpi sge, %85, %91 : vector<1x256xi32>
    %93 = arith.andi %90, %92 : vector<1x256xi1>
    %c16_i32_30 = arith.constant 16 : i32
    %94 = vector.broadcast %c16_i32_30 : i32 to vector<1x256xi32>
    %95 = arith.cmpi slt, %85, %94 : vector<1x256xi32>
    %96 = arith.andi %93, %95 : vector<1x256xi1>
    %cst_31 = arith.constant 0.000000e+00 : f32
    %97 = vector.shape_cast %96 : vector<1x256xi1> to vector<1x256xi1>
    %98 = vector.broadcast %97 : vector<1x256xi1> to vector<4x256xi1>
    %99 = vector.broadcast %cst_31 : f32 to vector<4x256xf32>
    %100 = arith.select %98, %81, %99 : vector<4x256xi1>, vector<4x256xf32>
    %c0_i32_32 = arith.constant 0 : i32
    %101 = vector.broadcast %c0_i32_32 : i32 to vector<1x256xi32>
    %102 = arith.addi %9, %101 : vector<1x256xi32>
    %c0_i32_33 = arith.constant 0 : i32
    %103 = vector.broadcast %c0_i32_33 : i32 to vector<1x256xi32>
    %104 = arith.addi %12, %103 : vector<1x256xi32>
    %c0_i32_34 = arith.constant 0 : i32
    %105 = vector.broadcast %c0_i32_34 : i32 to vector<1x256xi32>
    %106 = arith.cmpi sge, %102, %105 : vector<1x256xi32>
    %c16_i32_35 = arith.constant 16 : i32
    %107 = vector.broadcast %c16_i32_35 : i32 to vector<1x256xi32>
    %108 = arith.cmpi slt, %102, %107 : vector<1x256xi32>
    %109 = arith.andi %106, %108 : vector<1x256xi1>
    %c0_i32_36 = arith.constant 0 : i32
    %110 = vector.broadcast %c0_i32_36 : i32 to vector<1x256xi32>
    %111 = arith.cmpi sge, %104, %110 : vector<1x256xi32>
    %112 = arith.andi %109, %111 : vector<1x256xi1>
    %c16_i32_37 = arith.constant 16 : i32
    %113 = vector.broadcast %c16_i32_37 : i32 to vector<1x256xi32>
    %114 = arith.cmpi slt, %104, %113 : vector<1x256xi32>
    %115 = arith.andi %112, %114 : vector<1x256xi1>
    %cst_38 = arith.constant 0.000000e+00 : f32
    %116 = vector.shape_cast %115 : vector<1x256xi1> to vector<1x256xi1>
    %117 = vector.broadcast %116 : vector<1x256xi1> to vector<4x256xi1>
    %118 = vector.broadcast %cst_38 : f32 to vector<4x256xf32>
    %119 = arith.select %117, %1, %118 : vector<4x256xi1>, vector<4x256xf32>
    %120 = vector.extract_strided_slice %1 {offsets = [0, 1], sizes = [4, 255], strides = [1, 1]} : vector<4x256xf32> to vector<4x255xf32>
    %cst_39 = arith.constant 0.000000e+00 : f32
    %121 = vector.broadcast %cst_39 : f32 to vector<4x1xf32>
    %122 = tpu.concatenate %120, %121 in 1 : vector<4x255xf32>, vector<4x1xf32> -> vector<4x256xf32>
    %c0_i32_40 = arith.constant 0 : i32
    %123 = vector.broadcast %c0_i32_40 : i32 to vector<1x256xi32>
    %124 = arith.addi %9, %123 : vector<1x256xi32>
    %c1_i32_41 = arith.constant 1 : i32
    %125 = vector.broadcast %c1_i32_41 : i32 to vector<1x256xi32>
    %126 = arith.addi %12, %125 : vector<1x256xi32>
    %c0_i32_42 = arith.constant 0 : i32
    %127 = vector.broadcast %c0_i32_42 : i32 to vector<1x256xi32>
    %128 = arith.cmpi sge, %124, %127 : vector<1x256xi32>
    %c16_i32_43 = arith.constant 16 : i32
    %129 = vector.broadcast %c16_i32_43 : i32 to vector<1x256xi32>
    %130 = arith.cmpi slt, %124, %129 : vector<1x256xi32>
    %131 = arith.andi %128, %130 : vector<1x256xi1>
    %c0_i32_44 = arith.constant 0 : i32
    %132 = vector.broadcast %c0_i32_44 : i32 to vector<1x256xi32>
    %133 = arith.cmpi sge, %126, %132 : vector<1x256xi32>
    %134 = arith.andi %131, %133 : vector<1x256xi1>
    %c16_i32_45 = arith.constant 16 : i32
    %135 = vector.broadcast %c16_i32_45 : i32 to vector<1x256xi32>
    %136 = arith.cmpi slt, %126, %135 : vector<1x256xi32>
    %137 = arith.andi %134, %136 : vector<1x256xi1>
    %cst_46 = arith.constant 0.000000e+00 : f32
    %138 = vector.shape_cast %137 : vector<1x256xi1> to vector<1x256xi1>
    %139 = vector.broadcast %138 : vector<1x256xi1> to vector<4x256xi1>
    %140 = vector.broadcast %cst_46 : f32 to vector<4x256xf32>
    %141 = arith.select %139, %122, %140 : vector<4x256xi1>, vector<4x256xf32>
    %142 = vector.extract_strided_slice %1 {offsets = [0, 15], sizes = [4, 241], strides = [1, 1]} : vector<4x256xf32> to vector<4x241xf32>
    %cst_47 = arith.constant 0.000000e+00 : f32
    %143 = vector.broadcast %cst_47 : f32 to vector<4x15xf32>
    %144 = tpu.concatenate %142, %143 in 1 : vector<4x241xf32>, vector<4x15xf32> -> vector<4x256xf32>
    %c1_i32_48 = arith.constant 1 : i32
    %145 = vector.broadcast %c1_i32_48 : i32 to vector<1x256xi32>
    %146 = arith.addi %9, %145 : vector<1x256xi32>
    %c-1_i32_49 = arith.constant -1 : i32
    %147 = vector.broadcast %c-1_i32_49 : i32 to vector<1x256xi32>
    %148 = arith.addi %12, %147 : vector<1x256xi32>
    %c0_i32_50 = arith.constant 0 : i32
    %149 = vector.broadcast %c0_i32_50 : i32 to vector<1x256xi32>
    %150 = arith.cmpi sge, %146, %149 : vector<1x256xi32>
    %c16_i32_51 = arith.constant 16 : i32
    %151 = vector.broadcast %c16_i32_51 : i32 to vector<1x256xi32>
    %152 = arith.cmpi slt, %146, %151 : vector<1x256xi32>
    %153 = arith.andi %150, %152 : vector<1x256xi1>
    %c0_i32_52 = arith.constant 0 : i32
    %154 = vector.broadcast %c0_i32_52 : i32 to vector<1x256xi32>
    %155 = arith.cmpi sge, %148, %154 : vector<1x256xi32>
    %156 = arith.andi %153, %155 : vector<1x256xi1>
    %c16_i32_53 = arith.constant 16 : i32
    %157 = vector.broadcast %c16_i32_53 : i32 to vector<1x256xi32>
    %158 = arith.cmpi slt, %148, %157 : vector<1x256xi32>
    %159 = arith.andi %156, %158 : vector<1x256xi1>
    %cst_54 = arith.constant 0.000000e+00 : f32
    %160 = vector.shape_cast %159 : vector<1x256xi1> to vector<1x256xi1>
    %161 = vector.broadcast %160 : vector<1x256xi1> to vector<4x256xi1>
    %162 = vector.broadcast %cst_54 : f32 to vector<4x256xf32>
    %163 = arith.select %161, %144, %162 : vector<4x256xi1>, vector<4x256xf32>
    %164 = vector.extract_strided_slice %1 {offsets = [0, 16], sizes = [4, 240], strides = [1, 1]} : vector<4x256xf32> to vector<4x240xf32>
    %cst_55 = arith.constant 0.000000e+00 : f32
    %165 = vector.broadcast %cst_55 : f32 to vector<4x16xf32>
    %166 = tpu.concatenate %164, %165 in 1 : vector<4x240xf32>, vector<4x16xf32> -> vector<4x256xf32>
    %c1_i32_56 = arith.constant 1 : i32
    %167 = vector.broadcast %c1_i32_56 : i32 to vector<1x256xi32>
    %168 = arith.addi %9, %167 : vector<1x256xi32>
    %c0_i32_57 = arith.constant 0 : i32
    %169 = vector.broadcast %c0_i32_57 : i32 to vector<1x256xi32>
    %170 = arith.addi %12, %169 : vector<1x256xi32>
    %c0_i32_58 = arith.constant 0 : i32
    %171 = vector.broadcast %c0_i32_58 : i32 to vector<1x256xi32>
    %172 = arith.cmpi sge, %168, %171 : vector<1x256xi32>
    %c16_i32_59 = arith.constant 16 : i32
    %173 = vector.broadcast %c16_i32_59 : i32 to vector<1x256xi32>
    %174 = arith.cmpi slt, %168, %173 : vector<1x256xi32>
    %175 = arith.andi %172, %174 : vector<1x256xi1>
    %c0_i32_60 = arith.constant 0 : i32
    %176 = vector.broadcast %c0_i32_60 : i32 to vector<1x256xi32>
    %177 = arith.cmpi sge, %170, %176 : vector<1x256xi32>
    %178 = arith.andi %175, %177 : vector<1x256xi1>
    %c16_i32_61 = arith.constant 16 : i32
    %179 = vector.broadcast %c16_i32_61 : i32 to vector<1x256xi32>
    %180 = arith.cmpi slt, %170, %179 : vector<1x256xi32>
    %181 = arith.andi %178, %180 : vector<1x256xi1>
    %cst_62 = arith.constant 0.000000e+00 : f32
    %182 = vector.shape_cast %181 : vector<1x256xi1> to vector<1x256xi1>
    %183 = vector.broadcast %182 : vector<1x256xi1> to vector<4x256xi1>
    %184 = vector.broadcast %cst_62 : f32 to vector<4x256xf32>
    %185 = arith.select %183, %166, %184 : vector<4x256xi1>, vector<4x256xf32>
    %186 = vector.extract_strided_slice %1 {offsets = [0, 17], sizes = [4, 239], strides = [1, 1]} : vector<4x256xf32> to vector<4x239xf32>
    %cst_63 = arith.constant 0.000000e+00 : f32
    %187 = vector.broadcast %cst_63 : f32 to vector<4x17xf32>
    %188 = tpu.concatenate %186, %187 in 1 : vector<4x239xf32>, vector<4x17xf32> -> vector<4x256xf32>
    %c1_i32_64 = arith.constant 1 : i32
    %189 = vector.broadcast %c1_i32_64 : i32 to vector<1x256xi32>
    %190 = arith.addi %9, %189 : vector<1x256xi32>
    %c1_i32_65 = arith.constant 1 : i32
    %191 = vector.broadcast %c1_i32_65 : i32 to vector<1x256xi32>
    %192 = arith.addi %12, %191 : vector<1x256xi32>
    %c0_i32_66 = arith.constant 0 : i32
    %193 = vector.broadcast %c0_i32_66 : i32 to vector<1x256xi32>
    %194 = arith.cmpi sge, %190, %193 : vector<1x256xi32>
    %c16_i32_67 = arith.constant 16 : i32
    %195 = vector.broadcast %c16_i32_67 : i32 to vector<1x256xi32>
    %196 = arith.cmpi slt, %190, %195 : vector<1x256xi32>
    %197 = arith.andi %194, %196 : vector<1x256xi1>
    %c0_i32_68 = arith.constant 0 : i32
    %198 = vector.broadcast %c0_i32_68 : i32 to vector<1x256xi32>
    %199 = arith.cmpi sge, %192, %198 : vector<1x256xi32>
    %200 = arith.andi %197, %199 : vector<1x256xi1>
    %c16_i32_69 = arith.constant 16 : i32
    %201 = vector.broadcast %c16_i32_69 : i32 to vector<1x256xi32>
    %202 = arith.cmpi slt, %192, %201 : vector<1x256xi32>
    %203 = arith.andi %200, %202 : vector<1x256xi1>
    %cst_70 = arith.constant 0.000000e+00 : f32
    %204 = vector.shape_cast %203 : vector<1x256xi1> to vector<1x256xi1>
    %205 = vector.broadcast %204 : vector<1x256xi1> to vector<4x256xi1>
    %206 = vector.broadcast %cst_70 : f32 to vector<4x256xf32>
    %207 = arith.select %205, %188, %206 : vector<4x256xi1>, vector<4x256xf32>
    %208 = tpu.concatenate %34, %56, %78, %100, %119, %141, %163, %185, %207 in 0 : vector<4x256xf32>, vector<4x256xf32>, vector<4x256xf32>, vector<4x256xf32>, vector<4x256xf32>, vector<4x256xf32>, vector<4x256xf32>, vector<4x256xf32>, vector<4x256xf32> -> vector<36x256xf32>
    %c0_71 = arith.constant 0 : index
    %c0_72 = arith.constant 0 : index
    %209 = vector.load %arg2[%c0_71, %c0_72] : memref<8x36xf32, #tpu.memory_space<vmem>>, vector<8x36xf32>
    %cst_73 = arith.constant dense<0.000000e+00> : vector<8x256xf32>
    %210 = tpu.matmul %209, %208, %cst_73 {dimension_numbers = #tpu.dot_dimension_numbers<[1], [0], [0], [1], [0, 0, 1, 1], [], []>} : vector<8x36xf32>, vector<36x256xf32>, vector<8x256xf32> -> vector<8x256xf32>
    %c0_74 = arith.constant 0 : index
    %c0_75 = arith.constant 0 : index
    %c0_76 = arith.constant 0 : index
    %211 = vector.load %arg3[%c0_74, %c0_75, %c0_76] : memref<1x8x256xf32, #tpu.memory_space<vmem>>, vector<1x8x256xf32>
    %212 = vector.shape_cast %211 : vector<1x8x256xf32> to vector<8x256xf32>
    %213 = vector.shape_cast %210 : vector<8x256xf32> to vector<1x8x256xf32>
    tpu.vector_store %arg3[%c0_74, %c0_75, %c0_76], %213 {strides = array<i32>} : memref<1x8x256xf32, #tpu.memory_space<vmem>>, vector<1x8x256xf32>,
    %cst_77 = arith.constant dense<0.000000e+00> : vector<8xf32>
    %214 = vector.multi_reduction <add>, %210, %cst_77 [1] : vector<8x256xf32> to vector<8xf32>
    %215 = vector.shape_cast %214 : vector<8xf32> to vector<8x1xf32>
    %216 = arith.mulf %210, %210 : vector<8x256xf32>
    %cst_78 = arith.constant dense<0.000000e+00> : vector<8xf32>
    %217 = vector.multi_reduction <add>, %216, %cst_78 [1] : vector<8x256xf32> to vector<8xf32>
    %218 = vector.shape_cast %217 : vector<8xf32> to vector<8x1xf32>
    %219 = tpu.concatenate %215, %218 in 1 : vector<8x1xf32>, vector<8x1xf32> -> vector<8x2xf32>
    %c0_79 = arith.constant 0 : index
    %c0_80 = arith.constant 0 : index
    %c0_81 = arith.constant 0 : index
    %220 = vector.load %arg4[%c0_79, %c0_80, %c0_81] : memref<1x8x2xf32, #tpu.memory_space<vmem>>, vector<1x8x2xf32>
    %221 = vector.shape_cast %220 : vector<1x8x2xf32> to vector<8x2xf32>
    %222 = vector.shape_cast %219 : vector<8x2xf32> to vector<1x8x2xf32>
    tpu.vector_store %arg4[%c0_79, %c0_80, %c0_81], %222 {strides = array<i32>} : memref<1x8x2xf32, #tpu.memory_space<vmem>>, vector<1x8x2xf32>,
    return
  }
  func.func @transform_0(%arg0: i32) -> (i32, i32, i32) {
    %c0_i32 = arith.constant 0 : i32
    %c0_i32_0 = arith.constant 0 : i32
    %c0_i32_1 = arith.constant 0 : i32
    return %arg0, %c0_i32, %c0_i32_0 : i32, i32, i32
  }
  func.func @transform_1(%arg0: i32) -> (i32, i32) {
    %c0_i32 = arith.constant 0 : i32
    %c0_i32_0 = arith.constant 0 : i32
    %c0_i32_1 = arith.constant 0 : i32
    return %c0_i32, %c0_i32_0 : i32, i32
  }
  func.func @transform_2(%arg0: i32) -> (i32, i32, i32) {
    %c0_i32 = arith.constant 0 : i32
    %c0_i32_0 = arith.constant 0 : i32
    %c0_i32_1 = arith.constant 0 : i32
    return %arg0, %c0_i32, %c0_i32_0 : i32, i32, i32
  }
  func.func @transform_3(%arg0: i32) -> (i32, i32, i32) {
    %c0_i32 = arith.constant 0 : i32
    %c0_i32_0 = arith.constant 0 : i32
    %c0_i32_1 = arith.constant 0 : i32
    return %arg0, %c0_i32, %c0_i32_0 : i32, i32, i32
  }
}

</mosaic_0001>

<bundles_post_ra>
// kernel: conv_block_forward.3
= control target key start
LH: loop header
LB: loop body
LE: loop exit
PB: predicated region body
PF: predicated region fallthrough
CT: control target
= control target key end

     0   :  { %s366_s15 = smov 0   ;;  %s399_s0 = inlined_call_operand.vmem [shape: f32[2,8,256], index: 0, kind: input, shape index: {}, may-alias: {0,4}]   ;;  %s400_s1 = inlined_call_operand.vmem [shape: f32[2,8,2], index: 1, kind: input, shape index: {}]   ;;  %s401_s2 = inlined_call_operand.vmem [shape: f32[8,1], index: 2, kind: input, shape index: {}]   ;;  %s402_s3 = inlined_call_operand.vmem [shape: f32[8,1], index: 3, kind: input, shape index: {}]   ;;  %s403_s4 = inlined_call_operand.vmem [shape: f32[2,8,256], index: 4, kind: output, shape index: {}, may-alias: {0,4}]  }
   0x1 LB: > { %s302_s16 = sadd.s32 4294967295, %s336_s15   ;;  %p306_p0 = scmp.ge.s32.totalorder %s336_s15, 1  ;;  %s336_s15 = sphi %s366_s15, %s14_s15  }
   0x2   : > { %p162_p1 = scmp.lt.s32.totalorder %s336_s15, 3 }
   0x4   : > { %p163_p2 = pnand %p306_p0, %p162_p1 }
   0x5   : > { %v198_v0 = vld [vmem:[%s400_s1] sm:$0xff] (!%p163_p2)  ;;  %v199_v1 = vld [vmem:[%s400_s1 + $0x8] sm:$0xff] (!%p163_p2)  ;;  %vm200_vm0 = vcmask (!%p163_p2), 15360   ;;  %s338_s21 = smov (!%p163_p2), 1   ;;  %v339_v11 = vmov (!%p163_p2), 0   ;;  %s340_s22 = smov (!%p163_p2), 127  }
   0x6   : > { %166 = sbr.rel (%p163_p2) target bundleno = 400 (0x190), region = 36  ;;  %v201_v2 = vsel (!%p163_p2), %vm200_vm0, %v198_v0, 0.0  ;;  %v202_v3 = vsel (!%p163_p2), %vm200_vm0, %v199_v1, 0.0  ;;  %326 = vset.pattern.permute.xlu1 (!%p163_p2), %v339_v11  ;;  %327 = vset.pattern.permute.xlu0 (!%p163_p2), %v339_v11  ;;  %v212_v13 = vld [vmem:[%s401_s2] sm:$0xff] (!%p163_p2)  ;;  %p188_p3 = scmp.lt.s32.totalorder (!%p163_p2), %s302_s16, 1 }
   0x7   : > { %v203_v4 = vadd.f32 (!%p163_p2), %v202_v3, %v201_v2  ;;  %v220_v16 = vld [vmem:[%s402_s3] sm:$0xff] (!%p163_p2) }
   0x9   : > { %v204_v5 = vmul.f32 (!%p163_p2), 0.001953125, %v203_v4 }
   0xb   : > { %v205_v6 = vmul.f32 (!%p163_p2), %v204_v5, %v204_v5 }
   0xd   : > { %207 = vrot.lane.b32.xlu0 %v205_v6, %s338_s21  ;;  %s405_s16 = smov (!%p188_p3, %s302_s16), 1 }
   0xe   : > { %s313_s27 = sshll.u32 %s405_s16, 4 }
   0xf   : > { %s192_s30 = scalar_lea.vmem %s399_s0, %s313_s27  ;;  %s197_s7 = scalar_lea.vmem %s403_s4, %s313_s27 }
  0x10   : > { %v223_v20 = vld [vmem:[%s192_s30] sm:$0xff]  ;;  %v224_v21 = vld [vmem:[%s192_s30 + $0x8] sm:$0xff] }
  0x7f   : > { %v208_v7 = vpop.permute.xlu0 %207 }
  0x80   : > { %v210_v8 = vsub.f32 %v204_v5, %v208_v7 }
  0x82   : > { %v211_v9 = vmax.f32 %v210_v8, 0.0 }
  0x84   : > { %v213_v10 = vadd.f32 1e-05, %v211_v9 }
  0x86   : > { %328 = vrsqrt.f32 %v213_v10 }
  0x90   : > { %v329_v12 = vpop.eup %328 }
  0x91   : > { %216 = vrot.lane.b32.xlu0 %v329_v12, %s340_s22 }
 0x103   : > { %v217_v14 = vpop.permute.xlu0 %216 }
 0x104   : > { %v219_v15 = vmul.f32 %v217_v14, %v212_v13 }
 0x106   : > { %v221_v17 = vmul.f32 %v219_v15, %v204_v5  ;;  %227 = vperm.xlu1 %326, %v219_v15  }
 0x108   : > { %v222_v18 = vsub.f32 %v220_v16, %v221_v17 }
 0x10a   : > { %234 = vperm.xlu1 %326, %v222_v18  }
 0x185   : > { %v228_v19 = vpop.permute.xlu1 %227 }
 0x186   : > { %v230_v22 = vmul.f32 %v228_v19, %v223_v20  ;;  %v231_v23 = vmul.f32 %v228_v19, %v224_v21 }
 0x189   : > { %v235_v24 = vpop.permute.xlu1 %234 }
 0x18a   : > { %v237_v25 = vadd.f32 %v235_v24, %v230_v22  ;;  %v238_v26 = vadd.f32 %v235_v24, %v231_v23 }
 0x18c   : > { %vm239_vm1 = vcmp.ge.f32.partialorder %v237_v25, 0.0  ;;  %vm240_vm2 = vcmp.ge.f32.partialorder %v238_v26, 0.0  ;;  %v241_v27 = vmul.f32 0.03, %v237_v25  ;;  %v242_v28 = vmul.f32 0.03, %v238_v26 }
 0x18e   : > { %v243_v29 = vsel %vm239_vm1, %v237_v25, %v241_v27  ;;  %v244_v30 = vsel %vm240_vm2, %v238_v26, %v242_v28 }
 0x18f   : > { %245 = vst [vmem:[%s197_s7] sm:$0xff] %v243_v29  ;;  %246 = vst [vmem:[%s197_s7 + $0x8] sm:$0xff] %v244_v30 }
 0x190 PF: > { %s14_s15 = sadd.s32 1, %s336_s15  }
 0x191   : > { %p11_p4 = scmp.ge.s32.totalorder %s14_s15, 4  }
 0x193   :  { %13 = sbr.rel (!%p11_p4) target bundleno = 1 (0x1), region = 66 }

// kernel: conv_block_forward.2
= control target key start
LH: loop header
LB: loop body
LE: loop exit
PB: predicated region body
PF: predicated region fallthrough
CT: control target
= control target key end

     0   :  { %s736_s12 = smov 0   ;;  %s1146_s0 = inlined_call_operand.vmem [shape: f32[2,4,256], index: 0, kind: input, shape index: {}]   ;;  %s1147_s1 = inlined_call_operand.vmem [shape: f32[8,36], index: 1, kind: input, shape index: {}]   ;;  %s1148_s2 = inlined_call_operand.vmem [shape: f32[2,8,256], index: 2, kind: output, shape index: {0}]   ;;  %s1149_s3 = inlined_call_operand.vmem [shape: f32[2,8,2], index: 3, kind: output, shape index: {1}]  }
   0x1 LB: > { %s617_s13 = sadd.s32 4294967295, %s705_s12   ;;  %p621_p0 = scmp.ge.s32.totalorder %s705_s12, 1  ;;  %s705_s12 = sphi %s736_s12, %s14_s12  }
   0x2   : > { %p140_p1 = scmp.lt.s32.totalorder %s705_s12, 3 }
   0x4   : > { %p141_p2 = pnand %p621_p0, %p140_p1 }
   0x5   : > { %p168_p3 = scmp.lt.s32.totalorder (!%p141_p2), %s617_s13, 1  ;;  %s707_s18 = smov (!%p141_p2), 16   ;;  %v715_v4 = vmov (!%p141_p2), 0.0   ;;  %v183_v5 = vlaneseq (!%p141_p2)  ;;  %v1163_v29 = vmov (!%p141_p2), 0  ;;  %v1173_v37 = vmov (!%p141_p2), 0 }
   0x6   : > { %144 = sbr.rel (%p141_p2) target bundleno = 535 (0x217), region = 28  ;;  %s708_s19 = smov (!%p141_p2), 17   ;;  %511 = vmatprep.mubr.f32.mxu0 (!%p141_p2), %v715_v4  ;;  %v1175_v38 = vmov (!%p141_p2), 0  ;;  %v1177_v39 = vmov (!%p141_p2), 0  ;;  %v1179_v40 = vmov (!%p141_p2), 0  ;;  %v1182_v41 = vmov (!%p141_p2), 0 }
   0x7   : > { %s709_s20 = smov (!%p141_p2), 1   ;;  %s710_s21 = smov (!%p141_p2), 15   ;;  %v184_v6 = vand.u32 (!%p141_p2), 127, %v183_v5  ;;  %v1190_v43 = vmov (!%p141_p2), 0  ;;  %v1198_v49 = vmov (!%p141_p2), 0  ;;  %v1203_v54 = vmov (!%p141_p2), 0 }
   0x8   : > { %s711_s22 = smov (!%p141_p2), 127   ;;  %s712_s23 = smov (!%p141_p2), 112   ;;  %v1213_v58 = vmov (!%p141_p2), 0 }
   0x9   : > { %s713_s24 = smov (!%p141_p2), 113   ;;  %s714_s25 = smov (!%p141_p2), 111   ;;  %v186_v7 = vcvt.s32.f32 (!%p141_p2), %v184_v6  ;;  %v185_v8 = vadd.s32 (!%p141_p2), 128, %v184_v6 }
   0xb   : > { %v188_v9 = vadd.f32 (!%p141_p2), 0.5, %v186_v7  ;;  %v187_v10 = vcvt.s32.f32 (!%p141_p2), %v185_v8 }
   0xd   : > { %s1295_s13 = smov (!%p168_p3, %s617_s13), 1  ;;  %v190_v11 = vmul.f32 0.0625, %v188_v9  ;;  %v189_v12 = vadd.f32 0.5, %v187_v10 }
   0xe   : > { %s632_s14 = sshll.u32 %s1295_s13, 3  ;;  %s633_s28 = sshll.u32 %s1295_s13, 4 }
   0xf   : > { %s172_s17 = scalar_lea.vmem %s1146_s0, %s632_s14  ;;  %v192_v13 = vfloor.f32 %v190_v11  ;;  %v191_v14 = vmul.f32 0.0625, %v189_v12  ;;  %s177_s4 = scalar_lea.vmem %s1148_s2, %s633_s28 }
  0x10   : > { %v752_v0 = vld [vmem:[%s172_s17] sm:$0xff]  ;;  %s181_s7 = scalar_lea.vmem %s1149_s3, %s632_s14 }
  0x11   : > { %v756_v1 = vcombine.high %v752_v0, %v752_v0  ;;  %v642_v15 = vtrunc.f32 %v192_v13  ;;  %v193_v16 = vfloor.f32 %v191_v14 }
  0x13   : > { %v663_v2 = vpack.i.bf16 %v756_v1, %v752_v0  ;;  %v683_v3 = vpack.i.bf16 %v752_v0, %v756_v1  ;;  %v643_v17 = vcvt.f32.s32 %v642_v15  ;;  %v644_v18 = vtrunc.f32 %v193_v16 }
  0x15   : > { %664 = vrot.lane.b32.xlu0 %v663_v2, %s707_s18  ;;  %674 = vrot.lane.b32.xlu1 %v663_v2, %s708_s19  ;;  %v196_v19 = vmul.u32 16, %v643_v17  ;;  %v645_v20 = vcvt.f32.s32 %v644_v18  ;;  %v211_v21 = vadd.s32 4294967295, %v643_v17  ;;  %vm292_vm2 = vcmp.ge.s32.totalorder %v643_v17, 0 }
  0x16   : > { %vm294_vm3 = vcmp.lt.s32.totalorder %v643_v17, 16  ;;  %v347_v46 = vadd.s32 1, %v643_v17 }
  0x17   : > { %v764_v22 = vsub.s32 %v184_v6, %v196_v19  ;;  %v197_v23 = vmul.u32 16, %v645_v20  ;;  %vm215_vm0 = vcmp.ge.s32.totalorder %v211_v21, 0  ;;  %vm217_vm1 = vcmp.lt.s32.totalorder %v211_v21, 16  ;;  %vm779_vm8 = vmand %vm292_vm2, %vm294_vm3 }
  0x18   : > { %vm293_vm4 = vcmp.ge.s32.totalorder %v645_v20, 0  ;;  %vm295_vm5 = vcmp.lt.s32.totalorder %v645_v20, 16  ;;  %v348_v26 = vadd.s32 1, %v645_v20  ;;  %vm771_vm6 = vmand %vm215_vm0, %vm217_vm1  ;;  %v1164_v29 = vsel %vm779_vm8, 4294967295, %v1163_v29 }
  0x19   : > { %669 = vrot.lane.b32.xlu0 %v663_v2, %s709_s20  ;;  %679 = vrot.lane.b32.xlu1 %v663_v2, %s710_s21  ;;  %v767_v24 = vadd.s32 4294967295, %v764_v22  ;;  %v769_v25 = vsub.s32 %v185_v8, %v197_v23  ;;  %vm1150_vm7 = vcmp.ge.s32.totalorder %v764_v22, 0  ;;  %v777_v28 = vadd.s32 1, %v764_v22  ;;  %vm786_vm9 = vmand %vm293_vm4, %vm295_vm5 }
  0x1a   : > { %v212_v30 = vadd.s32 4294967295, %v645_v20  ;;  %vm794_vm10 = vmand %vm771_vm6, %vm1150_vm7  ;;  %vm350_vm12 = vcmp.ge.s32.totalorder %v348_v26, 0  ;;  %vm352_vm13 = vcmp.lt.s32.totalorder %v348_v26, 16  ;;  %vm1155_vm0 = vcmp.lt.s32.totalorder %v764_v22, 16  ;;  %v436_v20 = vld [vmem:[%s1147_s1] sm:$0xff] }
  0x1b   : > { %v784_v31 = vadd.s32 1, %v769_v25  ;;  %vm1152_vm11 = vcmp.ge.s32.totalorder %v767_v24, 0  ;;  %v800_v34 = vadd.s32 4294967295, %v769_v25  ;;  %vm1151_vm15 = vcmp.ge.s32.totalorder %v777_v28, 0  ;;  %vm821_vm5 = vmand %vm350_vm12, %vm352_vm13 }
  0x1c   : > { %vm806_vm14 = vmand %vm779_vm8, %vm1152_vm11  ;;  %vm216_vm2 = vcmp.ge.s32.totalorder %v212_v30, 0  ;;  %vm218_vm3 = vcmp.lt.s32.totalorder %v212_v30, 16  ;;  %v1174_v37 = vsel %vm821_vm5, 4294967295, %v1173_v37  ;;  %vm1156_vm12 = vcmp.ge.s32.totalorder %v769_v25, 0 }
  0x1d   : > { %684 = vrot.lane.b32.xlu0 %v683_v3, %s711_s22  ;;  %689 = vrot.lane.b32.xlu1 %v683_v3, %s712_s23  ;;  %vm816_vm1 = vmand %vm779_vm8, %vm1151_vm15  ;;  %vm1153_vm4 = vcmp.ge.s32.totalorder %v784_v31, 0  ;;  %vm1181_vm8 = vcmp.ge.s32.totalorder %v800_v34, 0 }
  0x1e   : > { %vm829_vm7 = vmand %vm786_vm9, %vm1153_vm4 }
  0x1f   : > { %v1176_v38 = vsel %vm829_vm7, 4294967295, %v1175_v38  ;;  %vm838_vm11 = vmand %vm794_vm10, %vm1155_vm0  ;;  %vm1158_vm0 = vcmp.lt.s32.totalorder %v767_v24, 16 }
  0x20   : > { %v1178_v39 = vsel %vm838_vm11, 4294967295, %v1177_v39  ;;  %vm220_vm13 = vmand %vm216_vm2, %vm218_vm3  ;;  %vm1185_vm11 = vcmp.ge.s32.totalorder %v769_v25, 0 }
  0x21   : > { %694 = vrot.lane.b32.xlu0 %v683_v3, %s713_s24  ;;  %386 = vrot.lane.b32.xlu1 %v756_v1, %s714_s25  ;;  %vm847_vm4 = vmand %vm821_vm5, %vm1156_vm12 }
  0x22   : > { %v1180_v40 = vsel %vm847_vm4, 4294967295, %v1179_v40  ;;  %vm856_vm10 = vmand %vm821_vm5, %vm1181_vm8  ;;  %vm1188_vm5 = vcmp.ge.s32.totalorder %v784_v31, 0 }
  0x23   : > { %v1183_v41 = vsel %vm856_vm10, 4294967295, %v1182_v41  ;;  %vm1184_vm2 = vmmov %vm1181_vm8  ;;  %vm1160_vm8 = vcmp.lt.s32.totalorder %v784_v31, 16  ;;  %vm1189_vm10 = vcmp.lt.s32.totalorder %v800_v34, 16 }
  0x24   : > { %vm224_vm3 = vmand %vm220_vm13, %vm1184_vm2 }
  0x25   : > { %384 = vrot.lane.b32.xlu0 %v752_v0, %s714_s25  ;;  %vm247_vm4 = vmand %vm220_vm13, %vm1185_vm11  ;;  %vm1192_vm11 = vcmp.ge.s32.totalorder %v800_v34, 0 }
  0x26   : > { %vm870_vm15 = vmand %vm806_vm14, %vm1158_vm0  ;;  %vm1195_vm14 = vcmp.lt.s32.totalorder %v769_v25, 16 }
  0x27   : > { %vm272_vm2 = vmand %vm220_vm13, %vm1188_vm5  ;;  %vm1205_vm13 = vnez %v1176_v38  ;;  %vm1208_vm5 = vcmp.lt.s32.totalorder %v800_v34, 16 }
  0x28   : > { %vm879_vm7 = vmand %vm224_vm3, %vm1189_vm10  ;;  %vm1159_vm10 = vcmp.lt.s32.totalorder %v777_v28, 16 }
  0x29   : > { %v1191_v43 = vsel %vm879_vm7, 4294967295, %v1190_v43  ;;  %vm887_vm12 = vmand %vm786_vm9, %vm1192_vm11  ;;  %vm1200_vm11 = vcmp.ge.s32.totalorder %v767_v24, 0 }
  0x2a   : > { %vm893_vm0 = vmand %vm247_vm4, %vm1195_vm14 }
  0x2b   : > { %vm900_vm3 = vmand %vm272_vm2, %vm1160_vm8 }
  0x2c   : > { %v1199_v49 = vsel %vm900_vm3, 4294967295, %v1198_v49  ;;  %vm908_vm4 = vmand %vm771_vm6, %vm1200_vm11  ;;  %vm1212_vm3 = vnez %v1180_v40 }
  0x2d   : > { %vm916_vm2 = vmand %vm816_vm1, %vm1159_vm10  ;;  %vm1220_vm1 = vcmp.lt.s32.totalorder %v767_v24, 16 }
  0x2e   : > { %v1204_v54 = vsel %vm916_vm2, 4294967295, %v1203_v54  ;;  %vm924_vm11 = vmand %vm1205_vm13, %vm1160_vm8  ;;  %vm1211_vm2 = vcmp.lt.s32.totalorder %v769_v25, 16  ;;  %vm1215_vm8 = vcmp.ge.s32.totalorder %v777_v28, 0  ;;  %vm351_vm13 = vcmp.lt.s32.totalorder %v347_v46, 16 }
  0x2f   : > { %vm932_vm14 = vmand %vm887_vm12, %vm1208_vm5  ;;  %vm1218_vm5 = vcmask 130048  }
  0x30   : > { %vm940_vm7 = vmand %vm1212_vm3, %vm1211_vm2  ;;  %vm349_vm2 = vcmp.ge.s32.totalorder %v347_v46, 0 }
  0x31   : > { %v1214_v58 = vsel %vm940_vm7, 4294967295, %v1213_v58  ;;  %vm948_vm12 = vmand %vm771_vm6, %vm1215_vm8  ;;  %vm1223_vm7 = vnez %v1178_v39  ;;  %vm1224_vm6 = vcmask 138240  }
  0x32   : > { %vm1219_vm10 = vmmov %vm1218_vm5 }
  0x33   : > { %vm958_vm3 = vmand %vm908_vm4, %vm1220_vm1  ;;  %vm1228_vm1 = vcmp.lt.s32.totalorder %v777_v28, 16 }
  0x34   : > { %vm994_vm8 = vmand %vm349_vm2, %vm351_vm13  ;;  %vm1243_vm13 = vcmask 121856  }
  0x35   : > { %vm1244_vm2 = vmmov %vm1243_vm13 }
  0x87   : > { %v665_v47 = vpop.permute.xlu0 %664  ;;  %v675_v48 = vpop.permute.xlu1 %674 }
  0x88   : > { %v667_v51 = vunpack.i.h.bf16 %v665_v47  ;;  %v666_v52 = vunpack.i.l.bf16 %v665_v47  ;;  %v676_v53 = vunpack.i.l.bf16 %v675_v48  ;;  %v677_v57 = vunpack.i.h.bf16 %v675_v48 }
  0x8a   : > { %v240_v60 = vsel %vm1218_vm5, %v666_v52, %v667_v51  ;;  %v243_v61 = vsel %vm1219_vm10, 0.0, %v666_v52  ;;  %v210_v2 = vsel %vm1224_vm6, 0.0, %v676_v53  ;;  %vm1225_vm10 = vcmp.ge.s32.totalorder %v769_v25, 0  ;;  %vm979_vm5 = vmand %vm948_vm12, %vm1228_vm1 }
  0x8b   : > { %v256_v63 = vsel %vm1223_vm7, %v243_v61, 0.0  ;;  %v670_v3 = vpop.permute.xlu0 %669  ;;  %v680_v4 = vpop.permute.xlu1 %679  ;;  %v257_v5 = vsel %vm893_vm0, %v240_v60, 0.0  ;;  %vm971_vm4 = vmand %vm786_vm9, %vm1225_vm10  ;;  %vm1231_vm0 = vcmp.lt.s32.totalorder %v800_v34, 16  ;;  %vm1232_vm9 = vnez %v1183_v41 }
  0x8c   : > { %v672_v7 = vunpack.i.h.bf16 %v670_v3  ;;  %v671_v8 = vunpack.i.l.bf16 %v670_v3  ;;  %v682_v9 = vunpack.i.h.bf16 %v680_v4  ;;  %v405_v11 = vrot.slane %v256_v63, 4  ;;  %vm987_vm6 = vmand %vm1232_vm9, %vm1231_vm0 }
  0x8d   : > { %v681_v12 = vunpack.i.l.bf16 %v680_v4  ;;  %vm1235_vm10 = vcmask 138240   ;;  %vm388_vm7 = vcmask 908288   ;;  %vm1238_vm12 = vcmask 7168  }
  0x8e   : > { %v207_v14 = vsel %vm1235_vm10, %v676_v53, %v677_v57  ;;  %v288_v16 = vsel %vm1238_vm12, %v671_v8, %v672_v7  ;;  %vm1239_vm1 = vmmov %vm1238_vm12  ;;  %v406_v18 = vrot.slane %v257_v5, 4  ;;  %v233_v19 = vsel %vm958_vm3, %v210_v2, 0.0 }
  0x8f   : > { %v291_v17 = vsel %vm1239_vm1, 0.0, %v671_v8  ;;  %vm1240_vm0 = vcmp.lt.s32.totalorder %v769_v25, 16  ;;  %v266_v23 = vsel %vm1243_vm13, 0.0, %v681_v12  ;;  %v685_v26 = vpop.permute.xlu0 %684  ;;  %v690_v27 = vpop.permute.xlu1 %689  ;;  %v263_v30 = vsel %vm1244_vm2, %v681_v12, %v682_v9 }
  0x90   : > { %vm1006_vm9 = vmand %vm971_vm4, %vm1240_vm0  ;;  %v306_v21 = vsel %vm870_vm15, %v291_v17, 0.0  ;;  %v307_v32 = vsel %vm932_vm14, %v288_v16, 0.0  ;;  %vm1245_vm3 = vcmp.ge.s32.totalorder %v784_v31, 0  ;;  %vm1246_vm10 = vnez %v1174_v37 }
  0x91   : > { %vm1020_vm4 = vmand %vm1246_vm10, %vm1245_vm3  ;;  %v687_v33 = vunpack.i.h.bf16 %v685_v26  ;;  %v686_v34 = vunpack.i.l.bf16 %v685_v26  ;;  %v692_v35 = vunpack.i.h.bf16 %v690_v27  ;;  %vm1249_vm15 = vnez %v1191_v43 }
  0x92   : > { %v234_v36 = vsel %vm1249_vm15, %v207_v14, 0.0  ;;  %vm1250_vm12 = vcmp.ge.s32.totalorder %v764_v22, 0  ;;  %v411_v39 = vrot.slane %v306_v21, 4  ;;  %v691_v37 = vunpack.i.l.bf16 %v690_v27 }
  0x93   : > { %vm1030_vm1 = vmand %vm994_vm8, %vm1250_vm12  ;;  %v412_v40 = vrot.slane %v307_v32, 4  ;;  %vm1253_vm14 = vcmask 1043456   ;;  %vm1255_vm13 = vnez %v1164_v29  ;;  %vm1258_vm3 = vcmask 1039360   ;;  %v695_v50 = vpop.permute.xlu0 %694  ;;  %v387_v63 = vpop.permute.xlu1 %386 }
  0x94   : > { %v428_v41 = vsel %vm1253_vm14, %v233_v19, %v405_v11  ;;  %vm1254_vm0 = vmmov %vm1250_vm12  ;;  %v324_v43 = vsel %vm1258_vm3, %v687_v33, %v686_v34  ;;  %vm1260_vm15 = vnez %v1199_v49  ;;  %v281_v46 = vsel %vm979_vm5, %v266_v23, 0.0 }
  0x95   : > { %vm1039_vm2 = vmand %vm1255_vm13, %vm1254_vm0  ;;  %v282_v45 = vsel %vm1260_vm15, %v263_v30, 0.0  ;;  %vm1261_vm12 = vcmp.ge.s32.totalorder %v767_v24, 0  ;;  %vm1264_vm0 = vnez %v1204_v54  ;;  %vm1265_vm13 = vcmask 916480  }
  0x96   : > { %vm1259_vm10 = vmmov %vm1258_vm3  ;;  %v336_v47 = vsel %vm1264_vm0, %v324_v43, 0.0  ;;  %v373_v49 = vsel %vm1265_vm13, %v691_v37, 0.0  ;;  %vm1266_vm3 = vcmask 1043456   ;;  %vm1267_vm5 = vcmp.lt.s32.totalorder %v764_v22, 16 }
  0x97   : > { %v327_v44 = vsel %vm1259_vm10, %v686_v34, 0.0  ;;  %vm1053_vm14 = vmand %vm994_vm8, %vm1261_vm12  ;;  %v429_v51 = vsel %vm1266_vm3, %v234_v36, %v406_v18  ;;  %vm1271_vm12 = vnez %v1214_v58  ;;  %v697_v56 = vunpack.i.h.bf16 %v695_v50 }
  0x98   : > { %v337_v48 = vsel %vm924_vm11, %v327_v44, 0.0  ;;  %vm1067_vm10 = vmand %vm1030_vm1, %vm1267_vm5  ;;  %v383_v55 = vsel %vm1271_vm12, %v373_v49, 0.0  ;;  %v696_v60 = vunpack.i.l.bf16 %v695_v50  ;;  %v417_v22 = vrot.slane %v336_v47, 4 }
  0x99   : > { %v418_v53 = vrot.slane %v337_v48, 4  ;;  %vm1270_vm15 = vmmov %vm1265_vm13  ;;  %v424_v59 = vrot.slane %v383_v55, 4  ;;  %v318_v4 = vsel %vm1006_vm9, %v756_v1, 0.0  ;;  %vm1282_vm12 = vcmp.lt.s32.totalorder %v784_v31, 16  ;;  %v385_v31 = vpop.permute.xlu0 %384 }
  0x9a   : > { %v370_v54 = vsel %vm1270_vm15, %v692_v35, %v691_v37  ;;  %vm1272_vm11 = vmmov %vm1267_vm5  ;;  %v392_v9 = vsel %vm388_vm7, %v387_v63, 0.0  ;;  %vm1285_vm9 = vcmp.ge.s32.totalorder %v777_v28, 0  ;;  %v389_v17 = vsel %vm388_vm7, %v385_v31, %v387_v63 }
  0x9b   : > { %vm1078_vm0 = vmand %vm1039_vm2, %vm1272_vm11  ;;  %vm1280_vm2 = vcmask 924672   ;;  %v382_v8 = vsel %vm1067_vm10, %v370_v54, 0.0  ;;  %vm529_vm7 = vcmask 15360  }
  0x9c   : > { %vm1275_vm1 = vmmov %vm1266_vm3  ;;  %vm1277_vm3 = vcmp.lt.s32.totalorder %v767_v24, 16  ;;  %v343_v5 = vsel %vm1280_vm2, %v697_v56, %v696_v60  ;;  %v317_v7 = vsel %vm1078_vm0, %v752_v0, 0.0  ;;  %v423_v11 = vrot.slane %v382_v8, 4 }
  0x9d   : > { %v431_v61 = vsel %vm1275_vm1, %v282_v45, %v412_v40  ;;  %vm1276_vm13 = vmmov %vm1275_vm1 }
  0x9e   : > { %v430_v62 = vsel %vm1276_vm13, %v281_v46, %v411_v39  ;;  %vm1088_vm5 = vmand %vm1053_vm14, %vm1277_vm3  ;;  %v634_v2 = vpack.c.bf16 %v431_v61, %v429_v51  ;;  %vm437_vm3 = vcmask 293888  }
  0x9f   : > { %v636_v3 = vpack.c.bf16 %v430_v62, %v428_v41  ;;  %vm1281_vm15 = vmmov %vm1280_vm2  ;;  %v363_v10 = vsel %vm1088_vm5, %v343_v5, 0.0  ;;  %vm1293_vm2 = vcmask 7168  }
  0xa0   : > { %v346_v6 = vsel %vm1281_vm15, %v696_v60, 0.0  ;;  %vm1101_vm11 = vmand %vm1020_vm4, %vm1282_vm12  ;;  %635 = vmatprep.subr.bf16.mxu0 %v634_v2 }
  0xa1   : > { %v364_v1 = vsel %vm987_vm6, %v346_v6, 0.0  ;;  %vm393_vm4 = vmand %vm994_vm8, %vm1285_vm9  ;;  %637 = vmatpush1.bf16.msra.mxu0 %v636_v3  ;;  %v402_v15 = vsel %vm1101_vm11, %v392_v9, 0.0  ;;  %vm1290_vm8 = vcmp.lt.s32.totalorder %v777_v28, 16 }
  0xa2   : > { %vm1286_vm14 = vmmov %vm1275_vm1 }
  0xa3   : > { %v433_v0 = vsel %vm1286_vm14, %v318_v4, %v418_v53  ;;  %vm1287_vm10 = vmmov %vm1275_vm1 }
  0xa4   : > { %v435_v12 = vsel %vm1287_vm10, %v364_v1, %v424_v59  ;;  %vm1288_vm6 = vmmov %vm1275_vm1 }
  0xa5   : > { %v638_v13 = vpack.c.bf16 %v435_v12, %v433_v0  ;;  %v432_v14 = vsel %vm1288_vm6, %v317_v7, %v417_v22  ;;  %vm1289_vm0 = vmmov %vm1275_vm1 }
  0xa6   : > { %v434_v16 = vsel %vm1289_vm0, %v363_v10, %v423_v11  ;;  %vm395_vm1 = vmand %vm393_vm4, %vm1290_vm8 }
  0xa7   : > { %v640_v18 = vpack.c.bf16 %v434_v16, %v432_v14  ;;  %639 = vmatprep.subr.bf16.mxu0 %v638_v13  ;;  %v401_v19 = vsel %vm395_vm1, %v389_v17, 0.0  ;;  %vm1291_vm13 = vmmov %vm1289_vm0 }
  0xa8   : > { %vm1292_vm5 = vmmov %vm1289_vm0 }
  0xa9   : > { %641 = vmatpush1.bf16.msra.mxu0 %v640_v18 }
  0xaa   : > { %627 = vmatprep.subr.msk.mxu0 %vm1291_vm13, %v402_v15 }
  0xad   : > { %628 = vmatpush1.msk.msra.mxu0 %vm1292_vm5, %v401_v19 }
  0xae   : > { %629 = vmatmul.mubr.msk.f32.vlgmr.msra.gmra.mrb[0].mxu0 %vm437_vm3, %v436_v20 }
 0x181   : > { %v513_v28 = vpop.f32.mrb[0].mxu0 }
 0x182   : > { %v515_v21 = vpop.f32.mrb[1].mxu0  ;;  %518 = vst [vmem:[%s177_s4] sm:$0xff] %v513_v28  ;;  %v523_v23 = vmul.f32 %v513_v28, %v513_v28 }
 0x183   : > { %519 = vst [vmem:[%s177_s4 + $0x8] sm:$0xff] %v515_v21  ;;  %v524_v26 = vmul.f32 %v515_v21, %v515_v21  ;;  %v520_v27 = vadd.f32 %v515_v21, %v513_v28 }
 0x185   : > { %521 = vadd.xlane.f32.xlu1 %v520_v27  ;;  %v525_v30 = vadd.f32 %v524_v26, %v523_v23 }
 0x187   : > { %526 = vadd.xlane.f32.xlu0 %v525_v30 }
 0x212   : > { %v522_v32 = vpop.xlane.xlu1 %521 }
 0x214   : > { %v527_v25 = vpop.xlane.xlu0 %526 }
 0x215   : > { %v528_v33 = vsel %vm1293_vm2, %v522_v32, %v527_v25 }
 0x216   : > { %530 = vst.msk [vmem:[%s181_s7] sm:$0xff] %vm529_vm7, %v528_v33 }
 0x217 PF: > { %s14_s12 = sadd.s32 1, %s705_s12  }
 0x218   : > { %p11_p4 = scmp.ge.s32.totalorder %s14_s12, 4  }
 0x21a   :  { %13 = sbr.rel (!%p11_p4) target bundleno = 1 (0x1), region = 70 }

</bundles_post_ra>
